<compile_context>
chip_gen: v5e
topology: v5e:2x2
jax: 0.10.0
libtpu: 0.0.40
codegen_flags: <defaults>
</compile_context>

<pallas_src>
import jax
import jax.numpy as jnp
from jax.experimental import pallas as pl
from jax.experimental.pallas import tpu as pltpu


def childnet_kernel(f_ref, m_ref, w_ref, o_ref):
    # f/m/o: (B, G, Lg) VMEM tiles; w: (2, G, Lg) pre-scaled by 0.5.
    # y = f * (0.5*fw) + m * (0.5*mw)  ==  mean(stack([f*fw, m*mw]), axis=0)
    # w_ref[0]/w_ref[1] are (G, Lg) and broadcast once over the batch dim.
    o_ref[...] = (f_ref[...] * w_ref[0] + m_ref[...] * w_ref[1]).astype(o_ref.dtype)


def _pack_factor(L):
    # Largest sublane-pack factor G in {8,4,2,1} with L % G == 0 and lane dim
    # (L // G) a multiple of 128, so the packed last-two dims are (8,128)-tiled.
    for g in (8, 4, 2, 1):
        if L % g == 0 and (L // g) % 128 == 0:
            return g
    return 1


def prepare_packed_weights(father_weights, mother_weights, latent_size):
    """One-time (setup-time) transform: fold the 0.5 mean factor into the
    weights, reshape (1, L) -> (G, L // G) for the sublane-packed layout, and
    stack both weight vectors into a single (2, G, Lg) constant (one DMA).
    Must be re-run whenever the weights change."""
    L = latent_size
    G = _pack_factor(L)
    fw = (father_weights * 0.5).reshape(G, L // G)
    mw = (mother_weights * 0.5).reshape(G, L // G)
    return jnp.stack([fw, mw], axis=0), G


def childnet_forward(x_fathers, x_mothers, w_packed):
    """x_fathers, x_mothers: (B, R, C); w_packed: (2, G, R*C//G) pre-halved.
    Returns (B, R, C)."""
    B, R, C = x_fathers.shape
    L = R * C
    two, G, Lg = w_packed.shape
    assert two == 2 and G * Lg == L

    # Free glue reshapes of contiguous data: (B, R, C) -> (B, G, Lg).
    xf = x_fathers.reshape(B, G, Lg)
    xm = x_mothers.reshape(B, G, Lg)

    data_spec = pl.BlockSpec((B, G, Lg), lambda i: (0, 0, 0))
    weight_spec = pl.BlockSpec((2, G, Lg), lambda i: (0, 0, 0))

    out = pl.pallas_call(
        childnet_kernel,
        out_shape=jax.ShapeDtypeStruct((B, G, Lg), x_fathers.dtype),
        grid=(1,),  # single step: whole problem (~290 KB) trivially fits VMEM
        in_specs=[data_spec, data_spec, weight_spec],
        out_specs=data_spec,
        # Reuse x_fathers' HBM buffer for the output (shapes/dtypes match and
        # the packed xf is dead after the call).
        input_output_aliases={0: 0},
        compiler_params=pltpu.CompilerParams(
            dimension_semantics=("arbitrary",),
            # Let XLA fuse elementwise producers of the non-aliased inputs
            # into the kernel's input fetches (input 0 stays un-fused so the
            # output aliasing remains valid).
            allow_input_fusion=[False, True, True],
        ),
    )(xf, xm, w_packed)

    return out.reshape(B, R, C)


def init_params(latent_size, key):
    # Matches ChildNet.__init__: ones/2 for both weight vectors, randn bias.
    father_weights = jnp.ones((1, latent_size), jnp.float32) / 2.0
    mother_weights = jnp.ones((1, latent_size), jnp.float32) / 2.0
    bias = jax.random.normal(key, (1, latent_size), jnp.float32)  # unused in forward
    return father_weights, mother_weights, bias


if __name__ == "__main__":
    # Small shapes consistent with the module's (B, 18, 512) latents.
    B, R, C = 2, 8, 256
    latent_size = R * C

    key = jax.random.PRNGKey(0)
    k_f, k_m, k_b = jax.random.split(key, 3)

    x_fathers = jax.random.normal(k_f, (B, R, C), jnp.float32)
    x_mothers = jax.random.normal(k_m, (B, R, C), jnp.float32)

    father_weights, mother_weights, _bias = init_params(latent_size, k_b)

    # Pure-JAX reference of the PyTorch semantics (original, un-scaled weights).
    # Computed BEFORE the kernel call because x_fathers is donated to it.
    xf_flat = x_fathers.reshape(B, -1) * father_weights
    xm_flat = x_mothers.reshape(B, -1) * mother_weights
    y_ref = ((xf_flat + xm_flat) / 2.0).reshape(x_fathers.shape)

    # Setup-time param packing (fold 0.5, reshape + stack for one weight DMA).
    w_packed, _G = prepare_packed_weights(father_weights, mother_weights, latent_size)

    # Donate x_fathers so the input_output_aliases buffer reuse is effective.
    forward = jax.jit(childnet_forward, donate_argnums=(0,))

    y = forward(x_fathers, x_mothers, w_packed)
    y = jax.block_until_ready(y)

    assert y.shape == (B, R, C)
    assert jnp.allclose(y, y_ref, atol=1e-6, rtol=1e-6)

    print("KERNEL_OK")
</pallas_src>

<mosaic_0001>
module attributes {stable_mosaic.version = 11 : i64} {
  func.func @childnet_kernel(%arg0: i32, %arg1: memref<2x8x256xf32, #tpu.memory_space<vmem>>, %arg2: memref<2x8x256xf32, #tpu.memory_space<vmem>>, %arg3: memref<2x8x256xf32, #tpu.memory_space<vmem>>, %arg4: memref<2x8x256xf32, #tpu.memory_space<vmem>>) attributes {dimension_semantics = [#tpu.dimension_semantics<arbitrary>], iteration_bounds = array<i64: 1>, scalar_prefetch = 0 : i64, scratch_operands = 0 : i64, tpu.core_type = #tpu.core_type<tc>, window_params = [{pipeline_mode = #tpu.pipeline_mode<synchronous>, transform_indices = @transform_0, window_bounds = array<i64: 2, 8, 256>}, {pipeline_mode = #tpu.pipeline_mode<synchronous>, transform_indices = @transform_1, window_bounds = array<i64: 2, 8, 256>}, {pipeline_mode = #tpu.pipeline_mode<synchronous>, transform_indices = @transform_2, window_bounds = array<i64: 2, 8, 256>}, {pipeline_mode = #tpu.pipeline_mode<synchronous>, transform_indices = @transform_3, window_bounds = array<i64: 2, 8, 256>}]} {
    %c0 = arith.constant 0 : index
    %c0_0 = arith.constant 0 : index
    %c0_1 = arith.constant 0 : index
    %0 = vector.load %arg1[%c0, %c0_0, %c0_1] : memref<2x8x256xf32, #tpu.memory_space<vmem>>, vector<2x8x256xf32>
    %c0_2 = arith.constant 0 : index
    %c0_3 = arith.constant 0 : index
    %c0_4 = arith.constant 0 : index
    %1 = vector.load %arg3[%c0_2, %c0_3, %c0_4] : memref<2x8x256xf32, #tpu.memory_space<vmem>>, vector<1x8x256xf32>
    %2 = vector.shape_cast %1 : vector<1x8x256xf32> to vector<8x256xf32>
    %3 = vector.shape_cast %2 : vector<8x256xf32> to vector<1x8x256xf32>
    %4 = vector.broadcast %3 : vector<1x8x256xf32> to vector<2x8x256xf32>
    %5 = arith.mulf %0, %4 : vector<2x8x256xf32>
    %c0_5 = arith.constant 0 : index
    %c0_6 = arith.constant 0 : index
    %c0_7 = arith.constant 0 : index
    %6 = vector.load %arg2[%c0_5, %c0_6, %c0_7] : memref<2x8x256xf32, #tpu.memory_space<vmem>>, vector<2x8x256xf32>
    %c1 = arith.constant 1 : index
    %c0_8 = arith.constant 0 : index
    %c0_9 = arith.constant 0 : index
    %7 = vector.load %arg3[%c1, %c0_8, %c0_9] : memref<2x8x256xf32, #tpu.memory_space<vmem>>, vector<1x8x256xf32>
    %8 = vector.shape_cast %7 : vector<1x8x256xf32> to vector<8x256xf32>
    %9 = vector.shape_cast %8 : vector<8x256xf32> to vector<1x8x256xf32>
    %10 = vector.broadcast %9 : vector<1x8x256xf32> to vector<2x8x256xf32>
    %11 = arith.mulf %6, %10 : vector<2x8x256xf32>
    %12 = arith.addf %5, %11 : vector<2x8x256xf32>
    %c0_10 = arith.constant 0 : index
    %c0_11 = arith.constant 0 : index
    %c0_12 = arith.constant 0 : index
    %13 = vector.load %arg4[%c0_10, %c0_11, %c0_12] : memref<2x8x256xf32, #tpu.memory_space<vmem>>, vector<2x8x256xf32>
    tpu.vector_store %arg4[%c0_10, %c0_11, %c0_12], %12 {strides = array<i32>} : memref<2x8x256xf32, #tpu.memory_space<vmem>>, vector<2x8x256xf32>,
    return
  }
  func.func @transform_0(%arg0: i32) -> (i32, i32, i32) {
    %c0_i32 = arith.constant 0 : i32
    %c0_i32_0 = arith.constant 0 : i32
    %c0_i32_1 = arith.constant 0 : i32
    %c0_i32_2 = arith.constant 0 : i32
    return %c0_i32, %c0_i32_0, %c0_i32_1 : i32, i32, i32
  }
  func.func @transform_1(%arg0: i32) -> (i32, i32, i32) {
    %c0_i32 = arith.constant 0 : i32
    %c0_i32_0 = arith.constant 0 : i32
    %c0_i32_1 = arith.constant 0 : i32
    %c0_i32_2 = arith.constant 0 : i32
    return %c0_i32, %c0_i32_0, %c0_i32_1 : i32, i32, i32
  }
  func.func @transform_2(%arg0: i32) -> (i32, i32, i32) {
    %c0_i32 = arith.constant 0 : i32
    %c0_i32_0 = arith.constant 0 : i32
    %c0_i32_1 = arith.constant 0 : i32
    %c0_i32_2 = arith.constant 0 : i32
    return %c0_i32, %c0_i32_0, %c0_i32_1 : i32, i32, i32
  }
  func.func @transform_3(%arg0: i32) -> (i32, i32, i32) {
    %c0_i32 = arith.constant 0 : i32
    %c0_i32_0 = arith.constant 0 : i32
    %c0_i32_1 = arith.constant 0 : i32
    %c0_i32_2 = arith.constant 0 : i32
    return %c0_i32, %c0_i32_0, %c0_i32_1 : i32, i32, i32
  }
}

</mosaic_0001>

<bundles_post_ra>
// kernel: childnet_forward.1
= control target key start
LH: loop header
LB: loop body
LE: loop exit
PB: predicated region body
PF: predicated region fallthrough
CT: control target
= control target key end

     0   :  { %8 = vsyncpa [#allocation3], 0  ;;  %s269_s0 = inlined_call_operand.hbm [shape: f32[2,8,256], index: 0, kind: input, shape index: {}, may-alias: {0,3}]   ;;  %s270_s1 = inlined_call_operand.hbm [shape: f32[2,8,256], index: 1, kind: input, shape index: {}]   ;;  %s271_s2 = inlined_call_operand.hbm [shape: f32[2,8,256], index: 2, kind: input, shape index: {}]   ;;  %s272_s3 = inlined_call_operand.hbm [shape: f32[2,8,256], index: 3, kind: output, shape index: {}, may-alias: {0,3}]  }
   0x1   :  { %9 = vsyncpa [#allocation6], 0 }
   0x2   :  { %10 = vsyncpa [#allocation4], 0  ;;  %s28_s14 = sshll.u32 %s270_s1, 4  ;;  %s219_s15 = smov [#allocation5]   ;;  %s29_s14 = int_to_ptr.hbm [resolvable:$true] %s28_s14 }
   0x3   :  { %s30_s16 = sshll.u32 %s219_s15, 4  ;;  %s15_s19 = sshll.u32 %s269_s0, 4  ;;  %s31_s16 = int_to_ptr.vmem [resolvable:$true] %s30_s16  ;;  %s16_s19 = int_to_ptr.hbm [resolvable:$true] %s15_s19 }
   0x4   :  { %s220_s20 = smov 256   ;;  %s221_s21 = smov 16  }
   0x5   :  { %36 = dma.hbm_to_vmem [thread:$0]  %s29_s14, 512, %s31_s16, [#allocation6], %s220_s20, %s220_s20, %s221_s21  }
   0x6   :  { %s222_s22 = smov [#allocation2]   ;;  %s41_s1 = sshll.u32 %s271_s2, 4  ;;  %s42_s1 = int_to_ptr.hbm [resolvable:$true] %s41_s1 }
   0x7   :  { %s17_s23 = sshll.u32 %s222_s22, 4  ;;  %s223_s0 = smov [#allocation7]   ;;  %s18_s23 = int_to_ptr.vmem [resolvable:$true] %s17_s23 }
   0x8   :  { %23 = dma.hbm_to_vmem [thread:$0]  %s16_s19, 512, %s18_s23, [#allocation3], %s220_s20, %s220_s20, %s221_s21  }
   0x9   :  { %s43_s26 = sshll.u32 %s223_s0, 4  ;;  %s44_s26 = int_to_ptr.vmem [resolvable:$true] %s43_s26 }
   0xa   :  { %49 = dma.hbm_to_vmem [thread:$0]  %s42_s1, 512, %s44_s26, [#allocation6], %s220_s20, %s220_s20, %s221_s21  }
   0xb   :  { %213 = dma.done.wait [#allocation3], 512  }
   0xc   :  { %214 = vsyncadd [#allocation3], 4294966784 }
   0xd   :  { %215 = dma.done.wait [#allocation6], 1024  }
   0xe   :  { %216 = vsyncadd [#allocation6], 4294966272  ;;  %v62_v0 = vld [vmem:[#allocation2] sm:$0xff]  ;;  %v77_v4 = vld [vmem:[#allocation7 + $0x10] sm:$0xff]  ;;  %s224_s2 = smov [#allocation8]   ;;  %s97_s30 = sshll.u32 %s272_s3, 4  ;;  %s98_s30 = int_to_ptr.hbm [resolvable:$true] %s97_s30 }
   0xf   :  { %v66_v1 = vld [vmem:[#allocation7] sm:$0xff]  ;;  %v63_v5 = vld [vmem:[#allocation2 + $0x8] sm:$0xff]  ;;  %v78_v10 = vld [vmem:[#allocation7 + $0x18] sm:$0xff]  ;;  %s95_s27 = sshll.u32 %s224_s2, 4  ;;  %s96_s27 = int_to_ptr.vmem [resolvable:$true] %s95_s27 }
  0x10   :  { %v72_v2 = vld [vmem:[#allocation5] sm:$0xff]  ;;  %v68_v3 = vmul.f32 %v66_v1, %v62_v0  ;;  %v67_v6 = vld [vmem:[#allocation7 + $0x8] sm:$0xff]  ;;  %v64_v11 = vld [vmem:[#allocation2 + $0x10] sm:$0xff] }
  0x11   :  { %v79_v7 = vmul.f32 %v77_v4, %v72_v2  ;;  %v69_v8 = vmul.f32 %v67_v6, %v63_v5  ;;  %v73_v9 = vld [vmem:[#allocation5 + $0x8] sm:$0xff]  ;;  %v70_v13 = vmul.f32 %v66_v1, %v64_v11  ;;  %v74_v14 = vld [vmem:[#allocation5 + $0x10] sm:$0xff]  ;;  %v65_v15 = vld [vmem:[#allocation2 + $0x18] sm:$0xff] }
  0x12   :  { %v80_v12 = vmul.f32 %v78_v10, %v73_v9  ;;  %v75_v16 = vld [vmem:[#allocation5 + $0x18] sm:$0xff]  ;;  %v81_v18 = vmul.f32 %v77_v4, %v74_v14  ;;  %v71_v19 = vmul.f32 %v67_v6, %v65_v15 }
  0x13   :  { %v83_v17 = vadd.f32 %v79_v7, %v68_v3  ;;  %v82_v20 = vmul.f32 %v78_v10, %v75_v16 }
  0x14   :  { %v84_v21 = vadd.f32 %v80_v12, %v69_v8  ;;  %v85_v22 = vadd.f32 %v81_v18, %v70_v13 }
  0x15   :  { %87 = vst [vmem:[#allocation8] sm:$0xff] %v83_v17  ;;  %v86_v23 = vadd.f32 %v82_v20, %v71_v19 }
  0x16   :  { %88 = vst [vmem:[#allocation8 + $0x8] sm:$0xff] %v84_v21 }
  0x17   :  { %89 = vst [vmem:[#allocation8 + $0x10] sm:$0xff] %v85_v22 }
  0x18   :  { %90 = vst [vmem:[#allocation8 + $0x18] sm:$0xff] %v86_v23 }
  0x19   :  { %103 = dma.vmem_to_hbm [thread:$0]  %s96_s27, 512, %s98_s30, [#allocation4], %s220_s20, %s220_s20, %s221_s21  }
  0x1a   :  { %217 = dma.done.wait [#allocation4], 512  }
  0x1b   :  { %218 = vsyncadd [#allocation4], 4294966784 }
  0x1c   :  { %108 = vsyncpa [#allocation3], 1 }
  0x1d   :  { %109 = vsyncpa [#allocation6], 1 }
  0x1e   :  { %110 = vsyncpa [#allocation4], 1 }

</bundles_post_ra>
